<compile_context>
chip_gen: v5e
topology: v5e:2x2
jax: 0.10.0
libtpu: 0.0.40
codegen_flags: <defaults>
</compile_context>

<pallas_src>
import jax
import jax.numpy as jnp
from jax import lax
from jax.experimental import pallas as pl
from jax.experimental.pallas import tpu as pltpu


def _cdiv(a, b):
    return -(-a // b)


def _round_up(a, b):
    return (a + b - 1) // b * b


def _tpu_budgets():
    """Returns (vmem_limit_bytes, single_slab_max_bytes), generation dependent."""
    try:
        info = pltpu.get_tpu_info()
        vmem = int(getattr(info, "vmem_capacity_bytes", 64 * 1024 * 1024))
    except Exception:
        vmem = 64 * 1024 * 1024
    if vmem >= 100 * 1024 * 1024:                      # v5e / v6e: 128 MiB per core
        return 96 * 1024 * 1024, 56 * 1024 * 1024
    return 44 * 1024 * 1024, 20 * 1024 * 1024          # v7x: 64 MiB per TensorCore


def _attention_from_energy(energy):
    """softmax(rowmax(E) - E, axis=-1) == softmax(-E, axis=-1) (shift invariant).

    Numerically stable single-reduction form p = exp(rowmin(E) - E), with an
    EXACT divide (the approximate EUP reciprocal previously cost ~5e-3 abs
    error vs the PyTorch reference)."""
    m = jnp.min(energy, axis=-1, keepdims=True)
    p = jnp.exp(m - energy)
    return p / jnp.sum(p, axis=-1, keepdims=True)


def _csam_single_kernel(gamma_ref, x_ref, o_ref):
    """Bb full (C, N) slabs per grid step; grid = (B // Bb,)."""
    x = x_ref[...]                                                  # (Bb, C, Np)
    # Gram matrix, contracting the lane (N) axis of both operands directly
    # (no XLU transpose of the big tile).
    energy = jnp.einsum('bcn,bdn->bcd', x, x,
                        preferred_element_type=jnp.float32)         # (Bb, C, C)
    # Cast only the tiny (C,C) attention down to x.dtype so bf16 inputs feed
    # the MXU at full rate (no-op for f32).
    attn = _attention_from_energy(energy).astype(x.dtype)
    out = jnp.einsum('bcd,bdn->bcn', attn, x,
                     preferred_element_type=jnp.float32)            # (Bb, C, Np)
    o_ref[...] = (gamma_ref[0] * out + x.astype(jnp.float32)).astype(o_ref.dtype)


def _csam_attn_kernel(x_ref, attn_ref):
    """Pass 1 of the tiled path; grid = (B, nt).

    The (C, C) f32 output block itself is the energy accumulator (no extra
    persistent scratch); it is overwritten in place with softmax(-E) on the
    last N tile, then written back to HBM when the batch index advances."""
    t = pl.program_id(1)
    nt = pl.num_programs(1)
    x = x_ref[...]                                                  # (C, TN)

    @pl.when(t == 0)
    def _():
        attn_ref[...] = jnp.zeros_like(attn_ref)

    attn_ref[...] += lax.dot_general(
        x, x, dimension_numbers=(((1,), (1,)), ((), ())),
        preferred_element_type=jnp.float32)

    @pl.when(t == nt - 1)
    def _():
        attn_ref[...] = _attention_from_energy(attn_ref[...])


def _csam_apply_kernel(gamma_ref, attn_ref, x_ref, o_ref):
    """Pass 2 of the tiled path; grid = (B, nt), fully parallel."""
    x = x_ref[...]                                                  # (C, TN)
    attn = attn_ref[...].astype(x.dtype)                            # (C, C)
    out = jnp.dot(attn, x, preferred_element_type=jnp.float32)      # (C, TN) f32
    o_ref[...] = (gamma_ref[0] * out + x.astype(jnp.float32)).astype(o_ref.dtype)


def csam_pallas(x, gamma, *, single_slab_max_bytes=None, tile_n=None):
    """x: (B, C, H, W); gamma: scalar parameter (shape (1,) or ())."""
    B, C, H, W = x.shape
    N = H * W
    itemsize = x.dtype.itemsize
    gamma = jnp.asarray(gamma, dtype=jnp.float32).reshape(1)

    vmem_limit, slab_thresh = _tpu_budgets()
    if single_slab_max_bytes is None:
        single_slab_max_bytes = slab_thresh

    n_pad128 = _round_up(N, 128)
    slab_bytes = C * n_pad128 * itemsize
    # Per-batch-slab VMEM estimate for the single-slab path: double-buffered
    # input + output, one f32 dot-output temp (plus the f32 residual cast only
    # for sub-f32 inputs), plus the (C, C) energy/attention temporaries.
    n_f32_temps = 1 if itemsize >= 4 else 2
    est_single = 4 * slab_bytes + n_f32_temps * C * n_pad128 * 4 + 2 * C * C * 4
    use_single = tile_n is None and est_single <= single_slab_max_bytes

    x3 = x.reshape(B, C, N)

    if use_single:
        # Fold several batch slabs per grid step when C is small so each grid
        # step moves ~2-4 MiB (amortizes the ~0.35 us/step overhead and fills
        # the (8,128) sublane tiles / MXU dims).
        bb = 1
        if C < 32 and B > 1:
            target = 4 * 1024 * 1024
            for d in range(min(B, 64), 0, -1):
                if B % d == 0 and d * slab_bytes <= target \
                        and d * est_single <= vmem_limit // 2:
                    bb = d
                    break
        n_pad = n_pad128
        if n_pad != N:
            # Zero padding is exact: padded lanes add 0 to the N contraction
            # and the padded output columns are sliced off below.
            x3 = jnp.pad(x3, ((0, 0), (0, 0), (0, n_pad - N)))
        out3 = pl.pallas_call(
            _csam_single_kernel,
            out_shape=jax.ShapeDtypeStruct((B, C, n_pad), x.dtype),
            grid_spec=pltpu.PrefetchScalarGridSpec(
                num_scalar_prefetch=0,
                grid=(B // bb,),
                in_specs=[
                    pl.BlockSpec(memory_space=pltpu.MemorySpace.SMEM),    # gamma
                    pl.BlockSpec((bb, C, n_pad), lambda i: (i, 0, 0)),    # x slabs
                ],
                out_specs=pl.BlockSpec((bb, C, n_pad), lambda i: (i, 0, 0)),
            ),
            compiler_params=pltpu.CompilerParams(
                dimension_semantics=("parallel",),
                vmem_limit_bytes=vmem_limit),
        )(gamma, x3)
    else:
        if tile_n is None:
            # itemsize-aware, ~4 MiB of x per tile, lane-aligned, clamped to N.
            target_bytes = 4 * 1024 * 1024
            tile_n = max(128, (target_bytes // (C * itemsize)) // 128 * 128)
            tile_n = min(tile_n, n_pad128)
            # Spread tiles evenly over the 128-padded N to minimize tail waste.
            nt = _cdiv(n_pad128, tile_n)
            tile_n = _round_up(_cdiv(n_pad128, nt), 128)
        assert tile_n % 128 == 0
        nt = _cdiv(n_pad128, tile_n)
        n_pad = nt * tile_n
        if n_pad != N:
            x3 = jnp.pad(x3, ((0, 0), (0, 0), (0, n_pad - N)))

        # Triple-buffer the streamed x tiles to hide the DMA restart bubble at
        # batch boundaries (one extra tile of VMEM).
        x_spec = pl.BlockSpec((None, C, tile_n), lambda b, t: (b, 0, t),
                              pipeline_mode=pl.Buffered(3))

        # Pass 1: attention = softmax(-Gram(x)) per batch; tiny (B,C,C) output.
        attn = pl.pallas_call(
            _csam_attn_kernel,
            out_shape=jax.ShapeDtypeStruct((B, C, C), jnp.float32),
            grid_spec=pltpu.PrefetchScalarGridSpec(
                num_scalar_prefetch=0,
                grid=(B, nt),
                in_specs=[x_spec],
                out_specs=pl.BlockSpec((None, C, C), lambda b, t: (b, 0, 0)),
            ),
            compiler_params=pltpu.CompilerParams(
                dimension_semantics=("parallel", "arbitrary"),
                vmem_limit_bytes=vmem_limit),
        )(x3)

        # Pass 2: out_tile = gamma * (attn @ x_tile) + x_tile; both grid axes
        # are independent, so both v7x TensorCores are used even when B == 1.
        out3 = pl.pallas_call(
            _csam_apply_kernel,
            out_shape=jax.ShapeDtypeStruct((B, C, n_pad), x.dtype),
            grid_spec=pltpu.PrefetchScalarGridSpec(
                num_scalar_prefetch=0,
                grid=(B, nt),
                in_specs=[
                    pl.BlockSpec(memory_space=pltpu.MemorySpace.SMEM),     # gamma
                    pl.BlockSpec((None, C, C), lambda b, t: (b, 0, 0)),    # attn
                    x_spec,                                                # x tile
                ],
                out_specs=pl.BlockSpec((None, C, tile_n), lambda b, t: (b, 0, t)),
            ),
            compiler_params=pltpu.CompilerParams(
                dimension_semantics=("parallel", "parallel"),
                vmem_limit_bytes=vmem_limit),
        )(gamma, attn, x3)

    if n_pad != N:
        out3 = out3[:, :, :N]
    return out3.reshape(B, C, H, W)


def csam_ref(x, gamma):
    """Pure-JAX reference mirroring the PyTorch forward exactly (in f32)."""
    B, C, H, W = x.shape
    q = x.reshape(B, C, H * W).astype(jnp.float32)
    energy = jnp.einsum('bcn,bdn->bcd', q, q)
    energy_new = jnp.max(energy, axis=-1, keepdims=True) - energy
    attn = jax.nn.softmax(energy_new, axis=-1)
    out = jnp.einsum('bcd,bdn->bcn', attn, q).reshape(B, C, H, W)
    return jnp.asarray(gamma).reshape(1)[0] * out + x.astype(jnp.float32)


if __name__ == "__main__":
    key = jax.random.PRNGKey(0)
    # nn.Parameter(torch.zeros(1)) -> init 0.0; use a nonzero value so the
    # attention path is actually exercised (0.0 would make out == x trivially).
    gamma = jnp.array([0.5], dtype=jnp.float32)

    def check(out, ref, tag, tol=2e-3):
        assert out.shape == ref.shape, f"{tag}: shape {out.shape} != {ref.shape}"
        err = float(jnp.max(jnp.abs(out.astype(jnp.float32) - ref.astype(jnp.float32))))
        assert err < tol, f"{tag}: max abs err = {err}"

    # 1) Small lane-aligned shape -> single-slab path (batch folding, C < 32).
    B, C, H, W = 2, 4, 16, 16
    x = jax.random.normal(key, (B, C, H, W), dtype=jnp.float32)
    ref = csam_ref(x, gamma)
    out = csam_pallas(x, gamma)
    jax.block_until_ready(out)
    check(out, ref, "single-slab")

    # 2) Same inputs through the two-call N-tiled path (forced: 2 tiles of 128).
    out_tiled = csam_pallas(x, gamma, single_slab_max_bytes=0, tile_n=128)
    jax.block_until_ready(out_tiled)
    check(out_tiled, ref, "tiled")

    # 3) Unaligned H*W (and C) -> exercises explicit zero padding of N.
    x2 = jax.random.normal(jax.random.PRNGKey(1), (1, 6, 9, 9), dtype=jnp.float32)
    out2 = csam_pallas(x2, gamma)
    jax.block_until_ready(out2)
    check(out2, csam_ref(x2, gamma), "unaligned")

    # 4) bf16 input: the (C,C) attention is cast down to bf16 (x is NOT upcast)
    #    before the MXU dot; compare against an f32 reference with loose tol.
    xb = jax.random.normal(jax.random.PRNGKey(2), (2, 8, 16, 16), dtype=jnp.bfloat16)
    outb = csam_pallas(xb, gamma)
    jax.block_until_ready(outb)
    check(outb, csam_ref(xb.astype(jnp.float32), gamma), "bf16", tol=1e-1)

    print("KERNEL_OK")
</pallas_src>

<mosaic_0001>
module attributes {stable_mosaic.version = 11 : i64} {
  func.func @_csam_single_kernel(%arg0: i32, %arg1: memref<1xf32, #tpu.memory_space<smem>>, %arg2: memref<2x4x256xf32, #tpu.memory_space<vmem>>, %arg3: memref<2x4x256xf32, #tpu.memory_space<vmem>>) attributes {dimension_semantics = [#tpu.dimension_semantics<parallel>], iteration_bounds = array<i64: 1>, scalar_prefetch = 0 : i64, scratch_operands = 0 : i64, tpu.core_type = #tpu.core_type<tc>, window_params = [{transform_indices = @transform_0, window_bounds = array<i64: 1>}, {transform_indices = @transform_1, window_bounds = array<i64: 2, 4, 256>}, {transform_indices = @transform_2, window_bounds = array<i64: 2, 4, 256>}]} {
    %c0 = arith.constant 0 : index
    %c0_0 = arith.constant 0 : index
    %c0_1 = arith.constant 0 : index
    %0 = vector.load %arg2[%c0, %c0_0, %c0_1] : memref<2x4x256xf32, #tpu.memory_space<vmem>>, vector<2x4x256xf32>
    "tpu.trace_start"() <{level = 10 : i32, message = "bcn,bdn->bcd"}> : () -> ()
    %cst = arith.constant dense<0.000000e+00> : vector<2x4x4xf32>
    %1 = tpu.matmul %0, %0, %cst {dimension_numbers = #tpu.dot_dimension_numbers<[2], [2], [1], [1], [0, 0, 0, 1, 1, 1], [0], [0]>} : vector<2x4x256xf32>, vector<2x4x256xf32>, vector<2x4x4xf32> -> vector<2x4x4xf32>
    "tpu.trace_stop"() : () -> ()
    %cst_2 = arith.constant dense<0x7F800000> : vector<2x4xf32>
    %2 = vector.multi_reduction <minimumf>, %1, %cst_2 [2] : vector<2x4x4xf32> to vector<2x4xf32>
    %3 = vector.shape_cast %2 : vector<2x4xf32> to vector<2x4x1xf32>
    %4 = vector.broadcast %3 : vector<2x4x1xf32> to vector<2x4x4xf32>
    %5 = arith.subf %4, %1 : vector<2x4x4xf32>
    %6 = math.exp %5 : vector<2x4x4xf32>
    %cst_3 = arith.constant dense<0.000000e+00> : vector<2x4xf32>
    %7 = vector.multi_reduction <add>, %6, %cst_3 [2] : vector<2x4x4xf32> to vector<2x4xf32>
    %8 = vector.shape_cast %7 : vector<2x4xf32> to vector<2x4x1xf32>
    %9 = vector.broadcast %8 : vector<2x4x1xf32> to vector<2x4x4xf32>
    %10 = arith.divf %6, %9 : vector<2x4x4xf32>
    "tpu.trace_start"() <{level = 10 : i32, message = "bcd,bdn->bcn"}> : () -> ()
    %cst_4 = arith.constant dense<0.000000e+00> : vector<2x4x256xf32>
    %11 = tpu.matmul %10, %0, %cst_4 {dimension_numbers = #tpu.dot_dimension_numbers<[2], [1], [1], [2], [0, 0, 0, 1, 1, 2], [0], [0]>} : vector<2x4x4xf32>, vector<2x4x256xf32>, vector<2x4x256xf32> -> vector<2x4x256xf32>
    "tpu.trace_stop"() : () -> ()
    %c0_5 = arith.constant 0 : index
    %12 = memref.load %arg1[%c0_5] : memref<1xf32, #tpu.memory_space<smem>>
    %13 = vector.broadcast %12 : f32 to vector<2x4x256xf32>
    %14 = arith.mulf %13, %11 : vector<2x4x256xf32>
    %15 = arith.addf %14, %0 : vector<2x4x256xf32>
    %c0_6 = arith.constant 0 : index
    %c0_7 = arith.constant 0 : index
    %c0_8 = arith.constant 0 : index
    %16 = vector.load %arg3[%c0_6, %c0_7, %c0_8] : memref<2x4x256xf32, #tpu.memory_space<vmem>>, vector<2x4x256xf32>
    tpu.vector_store %arg3[%c0_6, %c0_7, %c0_8], %15 {strides = array<i32>} : memref<2x4x256xf32, #tpu.memory_space<vmem>>, vector<2x4x256xf32>,
    return
  }
  func.func @transform_0(%arg0: i32) -> i32 {
    %c0_i32 = arith.constant 0 : i32
    %c0_i32_0 = arith.constant 0 : i32
    return %c0_i32 : i32
  }
  func.func @transform_1(%arg0: i32) -> (i32, i32, i32) {
    %c0_i32 = arith.constant 0 : i32
    %c0_i32_0 = arith.constant 0 : i32
    %c0_i32_1 = arith.constant 0 : i32
    return %arg0, %c0_i32, %c0_i32_0 : i32, i32, i32
  }
  func.func @transform_2(%arg0: i32) -> (i32, i32, i32) {
    %c0_i32 = arith.constant 0 : i32
    %c0_i32_0 = arith.constant 0 : i32
    %c0_i32_1 = arith.constant 0 : i32
    return %arg0, %c0_i32, %c0_i32_0 : i32, i32, i32
  }
}

</mosaic_0001>

<bundles_post_ra>
// kernel: tpu_custom_call.1
= control target key start
LH: loop header
LB: loop body
LE: loop exit
PB: predicated region body
PF: predicated region fallthrough
CT: control target
= control target key end

     0   :  { %8 = vsyncpa [#allocation4], 0  ;;  %s456_s0 = inlined_call_operand.<no memory space> [shape: f32[1], index: 0, kind: input, shape index: {}]   ;;  %s457_s1 = inlined_call_operand.hbm [shape: f32[2,4,256], index: 1, kind: input, shape index: {}]   ;;  %s458_s2 = inlined_call_operand.hbm [shape: f32[2,4,256], index: 2, kind: output, shape index: {}]  }
   0x1   :  { %9 = vsyncpa [#allocation5], 0  ;;  %s16_s11 = sshll.u32 %s457_s1, 4  ;;  %s408_s12 = smov [#allocation3]   ;;  %s17_s11 = int_to_ptr.hbm [resolvable:$true] %s16_s11 }
   0x2   :  { %s18_s13 = sshll.u32 %s408_s12, 4  ;;  %s409_s14 = smov 128   ;;  %s19_s13 = int_to_ptr.vmem [resolvable:$true] %s18_s13 }
   0x3   :  { %s410_s15 = smov 8  }
   0x4   :  { %24 = dma.hbm_to_vmem [thread:$0]  %s17_s11, 256, %s19_s13, [#allocation4], %s409_s14, %s409_s14, %s410_s15  }
   0x5   :  { %404 = dma.done.wait [#allocation4], 256  }
   0x6   :  { %405 = vsyncadd [#allocation4], 4294967040  ;;  %v29_v0 = vld [vmem:[#allocation3] sm:$0xff]  ;;  %v30_v1 = vld [vmem:[#allocation3 + $0x8] sm:$0xff]  ;;  %vm133_vm0 = vcmask 27648   ;;  %vm189_vm1 = vcmask 1043456   ;;  %v285_v56 = vstv %s456_s0 }
   0x7   :  { %32 = vst [vmem:[#allocation1] ss:$2 sm:$0xff] %v29_v0  ;;  %vm185_vm6 = vcmask 31744   ;;  %s411_s17 = smov [#allocation6]   ;;  %s323_s20 = sshll.u32 %s458_s2, 4  ;;  %s324_s20 = int_to_ptr.hbm [resolvable:$true] %s323_s20 }
   0x8   :  { %294 = vst [vmem:[#allocation1 + $0x10] ss:$2 sm:$0xff] %v30_v1  ;;  %s321_s18 = sshll.u32 %s411_s17, 4  ;;  %s322_s18 = int_to_ptr.vmem [resolvable:$true] %s321_s18 }
   0xe   :  { %v33_v2 = vld.sshfl [vmem:[#allocation1] sm:$0xff pattern:$0x75316420]  ;;  %v34_v3 = vld.sshfl [vmem:[#allocation1 + $0x8] sm:$0xff pattern:$0x75316420] }
   0xf   :  { %37 = vst [vmem:[#allocation1] ss:$2 sm:$0xff] %v29_v0  ;;  %v296_v59 = vld.sshfl [vmem:[#allocation1 + $0x18] sm:$0xff pattern:$0x75316420] }
  0x10   :  { %v295_v62 = vld.sshfl [vmem:[#allocation1 + $0x10] sm:$0xff pattern:$0x75316420] }
  0x16   :  { %v38_v4 = vld.sshfl [vmem:[#allocation1] sm:$0xff pattern:$0x75316420]  ;;  %v39_v5 = vld.sshfl [vmem:[#allocation1 + $0x8] sm:$0xff pattern:$0x75316420] }
  0x17   :  { %83 = vst [vmem:[#allocation1] ss:$2 sm:$0xff] %v30_v1  ;;  %57 = vmatpush.xpose.msra.mxu0 %v38_v4  ;;  %77 = vmatpush.xpose.msra.mxu1 %v39_v5 }
  0x1a   :  { %58 = vmatmul.f32.vlgmr.msra.gmra.mxu0 %v33_v2  ;;  %78 = vmatmul.f32.vlgmr.msra.gmra.mxu1 %v34_v3 }
  0x1e   :  { %v84_v6 = vld.sshfl [vmem:[#allocation1] sm:$0xff pattern:$0x75316420]  ;;  %v85_v7 = vld.sshfl [vmem:[#allocation1 + $0x8] sm:$0xff pattern:$0x75316420] }
  0x1f   :  { %88 = vst [vmem:[#allocation1] ss:$2 sm:$0xff] %v30_v1 }
  0x26   :  { %v89_v8 = vld.sshfl [vmem:[#allocation1] sm:$0xff pattern:$0x75316420]  ;;  %v90_v9 = vld.sshfl [vmem:[#allocation1 + $0x8] sm:$0xff pattern:$0x75316420] }
  0x27   :  { %108 = vmatpush.xpose.msra.mxu2 %v89_v8  ;;  %128 = vmatpush.xpose.msra.mxu3 %v90_v9  ;;  %182 = vst [vmem:[#allocation1] ss:$2 sm:$0xff] %v29_v0 }
  0x2a   :  { %109 = vmatmul.f32.vlgmr.msra.gmra.mxu2 %v84_v6  ;;  %129 = vmatmul.f32.vlgmr.msra.gmra.mxu3 %v85_v7 }
  0x2e   :  { %v183_v10 = vld.sshfl [vmem:[#allocation1] sm:$0xff pattern:$0x75316420]  ;;  %v184_v11 = vld.sshfl [vmem:[#allocation1 + $0x8] sm:$0xff pattern:$0x75316420] }
  0x2f   :  { %234 = vst [vmem:[#allocation1] ss:$2 sm:$0xff] %v30_v1  ;;  %338 = vmatpush.msk.msrb.mxu1 %vm189_vm1, %v184_v11  ;;  %336 = vmatpush.msk.msrb.mxu0 %vm189_vm1, %v183_v10 }
  0x36   :  { %v236_v30 = vld.sshfl [vmem:[#allocation1 + $0x8] sm:$0xff pattern:$0x75316420]  ;;  %v235_v31 = vld.sshfl [vmem:[#allocation1] sm:$0xff pattern:$0x75316420] }
  0x37   :  { %342 = vmatpush.msk.msrb.mxu3 %vm189_vm1, %v236_v30  ;;  %340 = vmatpush.msk.msrb.mxu2 %vm189_vm1, %v235_v31  ;;  %290 = vst [vmem:[#allocation1] ss:$2 sm:$0xff] %v29_v0 }
  0x3e   :  { %v292_v1 = vld.sshfl [vmem:[#allocation1 + $0x8] sm:$0xff pattern:$0x75316420]  ;;  %v291_v5 = vld.sshfl [vmem:[#allocation1] sm:$0xff pattern:$0x75316420] }
  0x97   :  { %v59_v15 = vpop.f32.mrf.mxu0  ;;  %v79_v16 = vpop.f32.mrf.mxu1 }
  0x98   :  { %v80_v18 = vadd.f32 %v79_v16, %v59_v15 }
  0x9a   :  { %v134_v19 = vsel %vm133_vm0, %v80_v18, inf }
  0xad   :  { %v110_v12 = vpop.f32.mrf.mxu2  ;;  %v130_v13 = vpop.f32.mrf.mxu3 }
  0xae   :  { %v131_v14 = vadd.f32 %v130_v13, %v110_v12 }
  0xb0   :  { %v137_v17 = vsel %vm133_vm0, %v131_v14, inf }
  0xb1   :  { %138 = vmin.xlane.f32.xlu0 %v137_v17 }
  0xb9   :  { %135 = vmin.xlane.f32.xlu0 %v134_v19 }
 0x124   :  { %v139_v20 = vpop.xlane.xlu0 %138 }
 0x125   :  { %v141_v21 = vsub.f32 %v139_v20, %v131_v14 }
 0x127   :  { %v144_v22 = vmul.f32 1.442695, %v141_v21 }
 0x129   :  { %348 = vpow2.f32 %v144_v22 }
 0x12c   :  { %v136_v23 = vpop.xlane.xlu0 %135 }
 0x12d   :  { %v140_v24 = vsub.f32 %v136_v23, %v80_v18 }
 0x12f   :  { %v349_v25 = vpop.eup %348  ;;  %v142_v26 = vmul.f32 1.442695, %v140_v24 }
 0x130   :  { %v149_v27 = vsel %vm133_vm0, %v349_v25, 0.0 }
 0x131   :  { %350 = vpow2.f32 %v142_v26  ;;  %150 = vadd.xlane.f32.xlu1 %v149_v27 }
 0x137   :  { %v351_v28 = vpop.eup %350 }
 0x138   :  { %v146_v29 = vsel %vm133_vm0, %v351_v28, 0.0 }
 0x139   :  { %147 = vadd.xlane.f32.xlu1 %v146_v29 }
 0x1a4   :  { %v151_v32 = vpop.xlane.xlu1 %150 }
 0x1a5   :  { %352 = vrcp.f32 %v151_v32  ;;  %v178_v37 = vand.u32 2147483648, %v151_v32  ;;  %v176_v39 = vand.u32 2147483647, %v151_v32  ;;  %vm172_vm3 = vweird.f32 %v151_v32 }
 0x1a7   :  { %v179_v42 = vor.u32 1.1754944e-38, %v178_v37  ;;  %vm177_vm5 = vcmp.eq.f32.partialorder %v176_v39, 8.507059e+37 }
 0x1ab   :  { %v353_v33 = vpop.eup %352 }
 0x1ac   :  { %v168_v34 = vmul.f32 %v353_v33, %v151_v32  ;;  %v148_v35 = vpop.xlane.xlu1 %147  ;;  %vm173_vm2 = vweird.f32 %v353_v33 }
 0x1ad   :  { %354 = vrcp.f32 %v148_v35  ;;  %vm174_vm4 = vmor %vm172_vm3, %vm173_vm2  ;;  %v163_v48 = vand.u32 2147483648, %v148_v35  ;;  %v161_v50 = vand.u32 2147483647, %v148_v35  ;;  %vm157_vm8 = vweird.f32 %v148_v35 }
 0x1ae   :  { %v169_v36 = vsub.f32 1.0, %v168_v34 }
 0x1af   :  { %v164_v52 = vor.u32 1.1754944e-38, %v163_v48  ;;  %vm162_vm10 = vcmp.eq.f32.partialorder %v161_v50, 8.507059e+37 }
 0x1b0   :  { %v170_v38 = vmul.f32 %v353_v33, %v169_v36 }
 0x1b2   :  { %v171_v40 = vadd.f32 %v353_v33, %v170_v38 }
 0x1b3   :  { %v355_v41 = vpop.eup %354 }
 0x1b4   :  { %v153_v43 = vmul.f32 %v355_v41, %v148_v35  ;;  %v175_v44 = vsel %vm174_vm4, %v353_v33, %v171_v40  ;;  %vm158_vm7 = vweird.f32 %v355_v41 }
 0x1b5   :  { %v180_v45 = vsel %vm177_vm5, %v179_v42, %v175_v44  ;;  %vm159_vm9 = vmor %vm157_vm8, %vm158_vm7 }
 0x1b6   :  { %v154_v46 = vsub.f32 1.0, %v153_v43  ;;  %v181_v47 = vmul.f32 %v349_v25, %v180_v45 }
 0x1b8   :  { %v155_v49 = vmul.f32 %v355_v41, %v154_v46  ;;  %341 = vmatmul.msk.f32.vlgmr.msrb.gmra.mxu2 %vm185_vm6, %v181_v47  ;;  %343 = vmatmul.msk.f32.vlgmr.msrb.gmra.mxu3 %vm185_vm6, %v181_v47 }
 0x1ba   :  { %v156_v51 = vadd.f32 %v355_v41, %v155_v49 }
 0x1bc   :  { %v160_v53 = vsel %vm159_vm9, %v355_v41, %v156_v51 }
 0x1bd   :  { %v165_v54 = vsel %vm162_vm10, %v164_v52, %v160_v53 }
 0x1be   :  { %v166_v55 = vmul.f32 %v351_v28, %v165_v54 }
 0x1c0   :  { %337 = vmatmul.msk.f32.vlgmr.msrb.gmra.mxu0 %vm185_vm6, %v166_v55  ;;  %339 = vmatmul.msk.f32.vlgmr.msrb.gmra.mxu1 %vm185_vm6, %v166_v55 }
 0x23b   :  { %v261_v57 = vpop.f32.mrf.mxu2  ;;  %v281_v58 = vpop.f32.mrf.mxu3 }
 0x23c   :  { %v288_v60 = vmul.f32 %v285_v56, %v261_v57  ;;  %v289_v61 = vmul.f32 %v285_v56, %v281_v58 }
 0x23d   :  { %v211_v63 = vpop.f32.mrf.mxu0  ;;  %v231_v0 = vpop.f32.mrf.mxu1 }
 0x23e   :  { %v304_v2 = vadd.f32 %v296_v59, %v289_v61  ;;  %v286_v3 = vmul.f32 %v285_v56, %v211_v63  ;;  %v287_v4 = vmul.f32 %v285_v56, %v231_v0  ;;  %v303_v6 = vadd.f32 %v295_v62, %v288_v60 }
 0x240   :  { %v310_v7 = vrot.slane %v304_v2, 4  ;;  %v302_v8 = vadd.f32 %v292_v1, %v287_v4  ;;  %v301_v9 = vadd.f32 %v291_v5, %v286_v3 }
 0x242   :  { %v309_v10 = vrot.slane %v302_v8, 4  ;;  %v312_v11 = vsel %vm189_vm1, %v303_v6, %v310_v7 }
 0x243   :  { %316 = vst [vmem:[#allocation6 + $0x8] sm:$0xff] %v312_v11 }
 0x244   :  { %v311_v12 = vsel %vm189_vm1, %v301_v9, %v309_v10 }
 0x245   :  { %315 = vst [vmem:[#allocation6] sm:$0xff] %v311_v12 }
 0x246   :  { %329 = dma.vmem_to_hbm [thread:$0]  %s322_s18, 256, %s324_s20, [#allocation5], %s409_s14, %s409_s14, %s410_s15  }
 0x247   :  { %406 = dma.done.wait [#allocation5], 256  }
 0x248   :  { %407 = vsyncadd [#allocation5], 4294967040 }
 0x249   :  { %334 = vsyncpa [#allocation4], 1 }
 0x24a   :  { %335 = vsyncpa [#allocation5], 1 }

</bundles_post_ra>
